<compile_context>
chip_gen: v7x
topology: tpu7x:2x2x1
jax: 0.10.0
libtpu: 0.0.40
codegen_flags: <defaults>
</compile_context>

<pallas_src>
import jax
import jax.numpy as jnp
from jax.experimental import pallas as pl
from jax.experimental.pallas import tpu as pltpu

_LANE = 128


# ---------------------------------------------------------------------------
# Kernel: fused 1x1 conv + bias + sigmoid on a (N, Cin, TILE_HW) spatial slab.
# ---------------------------------------------------------------------------
def _outconv_kernel(x_ref, w_ref, b_ref, o_ref):
    # x_ref: (N, Cin, T)  w_ref: (Cout, Cin)  b_ref: (Cout, 1)  o_ref: (N, Cout, T)
    x = x_ref[...]                     # T rides the lane axis (lane-dense)
    w = w_ref[...]
    b = b_ref[...]                     # (Cout, 1) broadcasts across N and lanes
    # Batched MXU matmul: (Cout, Cin) x (N, Cin, T) -> (N, Cout, T)
    y = jnp.einsum("oc,nct->not", w, x, preferred_element_type=jnp.float32)
    y = y + b[None]                    # bias add, then sigmoid on the EUP/VPU
    o_ref[...] = jax.nn.sigmoid(y).astype(o_ref.dtype)


def out_conv(x_nchw, weight, bias, *, out_dtype=jnp.float32,
             max_tile_hw=8192, vmem_budget_bytes=8 << 20):
    """OutConv forward: sigmoid(Conv2d(kernel_size=1)(x)).

    x_nchw: (N, Cin, H, W) f32
    weight: (Cout, Cin) or PyTorch-style (Cout, Cin, 1, 1)
    bias:   (Cout,)
    """
    N, Cin, H, W = x_nchw.shape
    weight = weight.reshape(weight.shape[0], Cin)     # accept (Cout,Cin,1,1) too
    Cout = weight.shape[0]
    HW = H * W

    # ---- Tile sizing: biggest lane-dense spatial tile that fits the budget ----
    # Double-buffered f32 bytes per lane column (input + output blocks).
    bytes_per_lane = 2 * N * (Cin + Cout) * 4
    vmem_cap = max(_LANE, (vmem_budget_bytes // bytes_per_lane) // _LANE * _LANE)
    hw_ceil = pl.cdiv(HW, _LANE) * _LANE              # HW rounded up to lane width
    tile_hw = min(hw_ceil, max_tile_hw, vmem_cap)     # multiple of 128 by construction
    hw_pad = pl.cdiv(HW, tile_hw) * tile_hw           # pad so the grid divides evenly
    n_hw = hw_pad // tile_hw

    # ---- Wrapper-side layout: flatten spatial (free reshape), pad if needed ----
    x_flat = x_nchw.reshape(N, Cin, HW)
    if hw_pad != HW:
        x_flat = jnp.pad(x_flat, ((0, 0), (0, 0), (0, hw_pad - HW)))
    b_col = bias.reshape(Cout, 1)

    out_flat = pl.pallas_call(
        _outconv_kernel,
        out_shape=jax.ShapeDtypeStruct((N, Cout, hw_pad), out_dtype),
        grid=(n_hw,),
        in_specs=[
            pl.BlockSpec((N, Cin, tile_hw), lambda t: (0, 0, t)),
            pl.BlockSpec((Cout, Cin), lambda t: (0, 0)),
            pl.BlockSpec((Cout, 1), lambda t: (0, 0)),
        ],
        out_specs=pl.BlockSpec((N, Cout, tile_hw), lambda t: (0, 0, t)),
        compiler_params=pltpu.CompilerParams(
            dimension_semantics=("parallel",),
            vmem_limit_bytes=32 << 20,
        ),
    )(x_flat, weight, b_col)

    if hw_pad != HW:
        out_flat = out_flat[:, :, :HW]
    return out_flat.reshape(N, Cout, H, W)


def init_params(key, in_channels, out_channels):
    kw, kb = jax.random.split(key)
    # PyTorch Conv2d default init scale on fan_in = Cin * 1 * 1.
    bound = (1.0 / in_channels) ** 0.5
    w = jax.random.uniform(kw, (out_channels, in_channels, 1, 1), jnp.float32,
                           minval=-bound, maxval=bound)
    b = jax.random.uniform(kb, (out_channels,), jnp.float32,
                           minval=-bound, maxval=bound)
    return {"w": w, "b": b}


if __name__ == "__main__":
    key = jax.random.PRNGKey(0)
    kx, kp = jax.random.split(key)

    N, Cin, H, W = 2, 4, 16, 16
    Cout = 8

    x = jax.random.normal(kx, (N, Cin, H, W), jnp.float32)   # NCHW like PyTorch
    params = init_params(kp, Cin, Cout)

    out = jax.jit(out_conv)(x, params["w"], params["b"])
    out = jax.block_until_ready(out)
    assert out.shape == (N, Cout, H, W), out.shape

    # Pure-JAX reference: sigmoid(1x1 conv + bias).
    w2d = params["w"].reshape(Cout, Cin)
    ref = jax.nn.sigmoid(
        jnp.einsum("oc,nchw->nohw", w2d, x)
        + params["b"][None, :, None, None])
    assert jnp.allclose(out, ref, atol=1e-5, rtol=1e-5)

    print("KERNEL_OK")
</pallas_src>

<mosaic_0001>
module attributes {stable_mosaic.version = 11 : i64} {
  func.func @_outconv_kernel(%arg0: i32, %arg1: memref<2x4x256xf32, #tpu.memory_space<vmem>>, %arg2: memref<8x4xf32, #tpu.memory_space<vmem>>, %arg3: memref<8x1xf32, #tpu.memory_space<vmem>>, %arg4: memref<2x8x256xf32, #tpu.memory_space<vmem>>) attributes {dimension_semantics = [#tpu.dimension_semantics<parallel>], iteration_bounds = array<i64: 1>, scalar_prefetch = 0 : i64, scratch_operands = 0 : i64, tpu.core_type = #tpu.core_type<tc>, window_params = [{transform_indices = @transform_0, window_bounds = array<i64: 2, 4, 256>}, {pipeline_mode = #tpu.pipeline_mode<synchronous>, transform_indices = @transform_1, window_bounds = array<i64: 8, 4>}, {pipeline_mode = #tpu.pipeline_mode<synchronous>, transform_indices = @transform_2, window_bounds = array<i64: 8, 1>}, {transform_indices = @transform_3, window_bounds = array<i64: 2, 8, 256>}]} {
    %c0 = arith.constant 0 : index
    %c0_0 = arith.constant 0 : index
    %c0_1 = arith.constant 0 : index
    %0 = vector.load %arg1[%c0, %c0_0, %c0_1] : memref<2x4x256xf32, #tpu.memory_space<vmem>>, vector<2x4x256xf32>
    %c0_2 = arith.constant 0 : index
    %c0_3 = arith.constant 0 : index
    %1 = vector.load %arg2[%c0_2, %c0_3] : memref<8x4xf32, #tpu.memory_space<vmem>>, vector<8x4xf32>
    %c0_4 = arith.constant 0 : index
    %c0_5 = arith.constant 0 : index
    %2 = vector.load %arg3[%c0_4, %c0_5] : memref<8x1xf32, #tpu.memory_space<vmem>>, vector<8x1xf32>
    "tpu.trace_start"() <{level = 10 : i32, message = "oc,nct->not"}> : () -> ()
    %cst = arith.constant dense<0.000000e+00> : vector<2x256x8xf32>
    %3 = tpu.matmul %0, %1, %cst {dimension_numbers = #tpu.dot_dimension_numbers<[1], [1], [0, 2], [0], [0, 0, 0, 2, 1, 0], [], []>} : vector<2x4x256xf32>, vector<8x4xf32>, vector<2x256x8xf32> -> vector<2x256x8xf32>
    %4 = tpu.transpose %3, [0, 2, 1] : vector<2x256x8xf32> -> vector<2x8x256xf32>
    "tpu.trace_stop"() : () -> ()
    %5 = vector.shape_cast %2 : vector<8x1xf32> to vector<1x8x1xf32>
    %6 = vector.broadcast %5 : vector<1x8x1xf32> to vector<2x8x256xf32>
    %7 = arith.addf %4, %6 : vector<2x8x256xf32>
    %8 = arith.negf %7 : vector<2x8x256xf32>
    %9 = math.exp %8 : vector<2x8x256xf32>
    %cst_6 = arith.constant 1.000000e+00 : f32
    %10 = vector.broadcast %cst_6 : f32 to vector<2x8x256xf32>
    %11 = arith.addf %10, %9 : vector<2x8x256xf32>
    %12 = arith.divf %10, %11 : vector<2x8x256xf32>
    %c0_7 = arith.constant 0 : index
    %c0_8 = arith.constant 0 : index
    %c0_9 = arith.constant 0 : index
    %13 = vector.load %arg4[%c0_7, %c0_8, %c0_9] : memref<2x8x256xf32, #tpu.memory_space<vmem>>, vector<2x8x256xf32>
    tpu.vector_store %arg4[%c0_7, %c0_8, %c0_9], %12 {strides = array<i32>} : memref<2x8x256xf32, #tpu.memory_space<vmem>>, vector<2x8x256xf32>,
    return
  }
  func.func @transform_0(%arg0: i32) -> (i32, i32, i32) {
    %c0_i32 = arith.constant 0 : i32
    %c0_i32_0 = arith.constant 0 : i32
    %c0_i32_1 = arith.constant 0 : i32
    return %c0_i32, %c0_i32_0, %arg0 : i32, i32, i32
  }
  func.func @transform_1(%arg0: i32) -> (i32, i32) {
    %c0_i32 = arith.constant 0 : i32
    %c0_i32_0 = arith.constant 0 : i32
    %c0_i32_1 = arith.constant 0 : i32
    return %c0_i32, %c0_i32_0 : i32, i32
  }
  func.func @transform_2(%arg0: i32) -> (i32, i32) {
    %c0_i32 = arith.constant 0 : i32
    %c0_i32_0 = arith.constant 0 : i32
    %c0_i32_1 = arith.constant 0 : i32
    return %c0_i32, %c0_i32_0 : i32, i32
  }
  func.func @transform_3(%arg0: i32) -> (i32, i32, i32) {
    %c0_i32 = arith.constant 0 : i32
    %c0_i32_0 = arith.constant 0 : i32
    %c0_i32_1 = arith.constant 0 : i32
    return %c0_i32, %c0_i32_0, %arg0 : i32, i32, i32
  }
}

</mosaic_0001>

<bundles_post_ra>
// kernel: out_conv.1
= control target key start
LH: loop header
LB: loop body
LE: loop exit
PB: predicated region body
PF: predicated region fallthrough
CT: control target
= control target key end

     0   :  { %vm152_vm0 = vcmask 31744   ;;  %v1157_v21 = vmov 0   ;;  %s1276_s0 = inlined_call_operand.vmem [shape: f32[2,4,256], index: 0, kind: input, shape index: {}]   ;;  %s1277_s1 = inlined_call_operand.vmem [shape: f32[8,4], index: 1, kind: input, shape index: {}]   ;;  %s1278_s2 = inlined_call_operand.vmem [shape: f32[8,1], index: 2, kind: input, shape index: {}]   ;;  %s1279_s3 = inlined_call_operand.vmem [shape: f32[2,8,256], index: 3, kind: output, shape index: {}]  }
   0x1   :  { %v14_v0 = vld [vmem:[%s1276_s0] sm:$0xff]  ;;  %v15_v3 = vld [vmem:[%s1276_s0 + $0x8] sm:$0xff] }
   0x2   :  { %24 = vxpose.xlu0.b32.start.end [1/1] (short) %v14_v0, 128  ;;  %v20_v1 = vcombine.high %v14_v0, %v14_v0  ;;  %v16_v2 = vld [vmem:[%s1277_s1] sm:$0xff]  ;;  %v21_v4 = vcombine.high %v15_v3, %v15_v3 }
   0x3   :  { %1036 = vmatprep.subr.msk.mxu0 %vm152_vm0, %v16_v2  ;;  %1134 = vmatprep.subr.msk.mxu1 %vm152_vm0, %v16_v2  ;;  %v17_v22 = vld [vmem:[%s1278_s2] sm:$0xff] }
   0x4   :  { %56 = vxpose.xlu1.b32.start.end [1/1] (short) %v20_v1, 128  ;;  %1037 = vmatpush3.xpose.msk.msra.mxu0 %vm152_vm0, %v16_v2 }
   0x5   :  { %1135 = vmatpush3.xpose.msk.msra.mxu1 %vm152_vm0, %v16_v2 }
  0x3f   :  { %88 = vxpose.xlu0.b32.start.end [1/1] (short) %v15_v3, 128 }
  0x41   :  { %120 = vxpose.xlu1.b32.start.end [1/1] (short) %v21_v4, 128 }
  0x68   :  { %1138 = vset.pattern.permute.xlu0 %v1157_v21 }
  0x82   :  { %v40_v5 = vpop.trf.xlu0 }
  0x83   :  { %1038 = vmatprep.mubr.msk.f32.mxu0 %vm152_vm0, %v40_v5 }
  0x84   :  { %v72_v6 = vpop.trf.xlu1 }
  0x86   :  { %v41_v7 = vpop.trf.xlu0 }
  0x87   :  { %1039 = vmatmul.mubr.msk.f32.vlgmr.msra.gmra.mrb[0].mxu0 %vm152_vm0, %v41_v7 }
  0x88   :  { %v73_v8 = vpop.trf.xlu1 }
  0x8a   :  { %v42_v9 = vpop.trf.xlu0 }
  0x8b   :  { %1041 = vmatprep.mubr.msk.f32.mxu0 %vm152_vm0, %v42_v9 }
  0x8c   :  { %v74_v10 = vpop.trf.xlu1 }
  0x8e   :  { %v43_v11 = vpop.trf.xlu0 }
  0x8f   :  { %1042 = vmatmul.mubr.msk.f32.gmra.mrb[2].mxu0 %vm152_vm0, %v43_v11 }
  0x90   :  { %v75_v12 = vpop.trf.xlu1 }
  0x92   :  { %v44_v13 = vpop.trf.xlu0 }
  0x93   :  { %1044 = vmatprep.mubr.msk.f32.mxu0 %vm152_vm0, %v44_v13 }
  0x94   :  { %v76_v14 = vpop.trf.xlu1 }
  0x96   :  { %v45_v15 = vpop.trf.xlu0 }
  0x97   :  { %1045 = vmatmul.mubr.msk.f32.gmra.mrb[4].mxu0 %vm152_vm0, %v45_v15 }
  0x98   :  { %v77_v16 = vpop.trf.xlu1 }
  0x9a   :  { %v46_v17 = vpop.trf.xlu0 }
  0x9b   :  { %1047 = vmatprep.mubr.msk.f32.mxu0 %vm152_vm0, %v46_v17 }
  0x9c   :  { %v78_v18 = vpop.trf.xlu1 }
  0x9e   :  { %v47_v19 = vpop.trf.xlu0 }
  0x9f   :  { %1048 = vmatmul.mubr.msk.f32.gmra.mrb[6].mxu0 %vm152_vm0, %v47_v19 }
  0xa0   :  { %v79_v20 = vpop.trf.xlu1 }
  0xa2   :  { %v48_v23 = vpop.trf.xlu0 }
  0xa3   :  { %1050 = vmatprep.mubr.msk.f32.mxu0 %vm152_vm0, %v48_v23 }
  0xa4   :  { %v80_v24 = vpop.trf.xlu1  ;;  %863 = vperm.xlu0 %1138, %v17_v22  }
  0xa6   :  { %v49_v25 = vpop.trf.xlu0 }
  0xa7   :  { %1051 = vmatmul.mubr.msk.f32.gmra.mrb[8].mxu0 %vm152_vm0, %v49_v25 }
  0xa8   :  { %v81_v26 = vpop.trf.xlu1 }
  0xaa   :  { %v50_v27 = vpop.trf.xlu0 }
  0xab   :  { %1053 = vmatprep.mubr.msk.f32.mxu0 %vm152_vm0, %v50_v27 }
  0xac   :  { %v82_v28 = vpop.trf.xlu1 }
  0xae   :  { %v51_v29 = vpop.trf.xlu0 }
  0xaf   :  { %1054 = vmatmul.mubr.msk.f32.gmra.mrb[10].mxu0 %vm152_vm0, %v51_v29 }
  0xb0   :  { %v83_v30 = vpop.trf.xlu1 }
  0xb2   :  { %v52_v31 = vpop.trf.xlu0 }
  0xb3   :  { %1056 = vmatprep.mubr.msk.f32.mxu0 %vm152_vm0, %v52_v31 }
  0xb4   :  { %v84_v32 = vpop.trf.xlu1 }
  0xb6   :  { %v53_v33 = vpop.trf.xlu0 }
  0xb7   :  { %1057 = vmatmul.mubr.msk.f32.gmra.mrb[12].mxu0 %vm152_vm0, %v53_v33 }
  0xb8   :  { %v85_v34 = vpop.trf.xlu1 }
  0xba   :  { %v54_v35 = vpop.trf.xlu0 }
  0xbb   :  { %1059 = vmatprep.mubr.msk.f32.mxu0 %vm152_vm0, %v54_v35 }
  0xbc   :  { %v86_v36 = vpop.trf.xlu1 }
  0xbe   :  { %v55_v37 = vpop.trf.xlu0 }
  0xbf   :  { %1060 = vmatmul.mubr.msk.f32.gmra.mrb[14].mxu0 %vm152_vm0, %v55_v37 }
  0xc0   :  { %1062 = vmatprep.mubr.msk.f32.mxu0 %vm152_vm0, %v72_v6  ;;  %v87_v38 = vpop.trf.xlu1 }
  0xc2   :  { %v104_v39 = vpop.trf.xlu0 }
  0xc3   :  { %1063 = vmatmul.mubr.msk.f32.gmra.mrb[16].mxu0 %vm152_vm0, %v73_v8  ;;  %1086 = vmatprep.mubr.msk.f32.mxu1 %vm152_vm0, %v104_v39 }
  0xc4   :  { %1065 = vmatprep.mubr.msk.f32.mxu0 %vm152_vm0, %v74_v10  ;;  %v136_v40 = vpop.trf.xlu1 }
  0xc6   :  { %v105_v41 = vpop.trf.xlu0 }
  0xc7   :  { %1087 = vmatmul.mubr.msk.f32.vlgmr.msra.gmra.mrb[0].mxu1 %vm152_vm0, %v105_v41  ;;  %1066 = vmatmul.mubr.msk.f32.gmra.mrb[18].mxu0 %vm152_vm0, %v75_v12 }
  0xc8   :  { %1068 = vmatprep.mubr.msk.f32.mxu0 %vm152_vm0, %v76_v14  ;;  %v137_v42 = vpop.trf.xlu1 }
  0xca   :  { %v106_v43 = vpop.trf.xlu0 }
  0xcb   :  { %1089 = vmatprep.mubr.msk.f32.mxu1 %vm152_vm0, %v106_v43  ;;  %1069 = vmatmul.mubr.msk.f32.gmra.mrb[20].mxu0 %vm152_vm0, %v77_v16 }
  0xcc   :  { %1071 = vmatprep.mubr.msk.f32.mxu0 %vm152_vm0, %v78_v18  ;;  %v138_v45 = vpop.trf.xlu1 }
  0xce   :  { %v107_v44 = vpop.trf.xlu0 }
  0xcf   :  { %1090 = vmatmul.mubr.msk.f32.gmra.mrb[2].mxu1 %vm152_vm0, %v107_v44  ;;  %1072 = vmatmul.mubr.msk.f32.gmra.mrb[22].mxu0 %vm152_vm0, %v79_v20 }
  0xd0   :  { %1074 = vmatprep.mubr.msk.f32.mxu0 %vm152_vm0, %v80_v24  ;;  %v139_v47 = vpop.trf.xlu1 }
  0xd2   :  { %v108_v46 = vpop.trf.xlu0 }
  0xd3   :  { %1092 = vmatprep.mubr.msk.f32.mxu1 %vm152_vm0, %v108_v46  ;;  %1075 = vmatmul.mubr.msk.f32.gmra.mrb[24].mxu0 %vm152_vm0, %v81_v26 }
  0xd4   :  { %1077 = vmatprep.mubr.msk.f32.mxu0 %vm152_vm0, %v82_v28  ;;  %v140_v50 = vpop.trf.xlu1 }
  0xd6   :  { %v109_v48 = vpop.trf.xlu0 }
  0xd7   :  { %1093 = vmatmul.mubr.msk.f32.gmra.mrb[4].mxu1 %vm152_vm0, %v109_v48  ;;  %1078 = vmatmul.mubr.msk.f32.gmra.mrb[26].mxu0 %vm152_vm0, %v83_v30 }
  0xd8   :  { %1080 = vmatprep.mubr.msk.f32.mxu0 %vm152_vm0, %v84_v32  ;;  %v141_v52 = vpop.trf.xlu1 }
  0xda   :  { %v110_v49 = vpop.trf.xlu0 }
  0xdb   :  { %1095 = vmatprep.mubr.msk.f32.mxu1 %vm152_vm0, %v110_v49  ;;  %1081 = vmatmul.mubr.msk.f32.gmra.mrb[28].mxu0 %vm152_vm0, %v85_v34 }
  0xdc   :  { %1083 = vmatprep.mubr.msk.f32.mxu0 %vm152_vm0, %v86_v36  ;;  %v142_v55 = vpop.trf.xlu1 }
  0xde   :  { %v111_v51 = vpop.trf.xlu0 }
  0xdf   :  { %1096 = vmatmul.mubr.msk.f32.gmra.mrb[6].mxu1 %vm152_vm0, %v111_v51  ;;  %1084 = vmatmul.mubr.msk.f32.gmra.mrb[30].mxu0 %vm152_vm0, %v87_v38 }
  0xe0   :  { %v143_v57 = vpop.trf.xlu1 }
  0xe2   :  { %v112_v53 = vpop.trf.xlu0 }
  0xe3   :  { %1098 = vmatprep.mubr.msk.f32.mxu1 %vm152_vm0, %v112_v53 }
  0xe4   :  { %v144_v60 = vpop.trf.xlu1 }
  0xe6   :  { %v113_v54 = vpop.trf.xlu0 }
  0xe7   :  { %1099 = vmatmul.mubr.msk.f32.gmra.mrb[8].mxu1 %vm152_vm0, %v113_v54 }
  0xe8   :  { %v145_v62 = vpop.trf.xlu1 }
  0xea   :  { %v114_v56 = vpop.trf.xlu0 }
  0xeb   :  { %1101 = vmatprep.mubr.msk.f32.mxu1 %vm152_vm0, %v114_v56 }
  0xec   :  { %v146_v1 = vpop.trf.xlu1 }
  0xee   :  { %v115_v58 = vpop.trf.xlu0 }
  0xef   :  { %1102 = vmatmul.mubr.msk.f32.gmra.mrb[10].mxu1 %vm152_vm0, %v115_v58 }
  0xf0   :  { %v147_v2 = vpop.trf.xlu1 }
  0xf2   :  { %v116_v59 = vpop.trf.xlu0 }
  0xf3   :  { %1104 = vmatprep.mubr.msk.f32.mxu1 %vm152_vm0, %v116_v59 }
  0xf4   :  { %v148_v3 = vpop.trf.xlu1 }
  0xf6   :  { %v117_v61 = vpop.trf.xlu0 }
  0xf7   :  { %1105 = vmatmul.mubr.msk.f32.gmra.mrb[12].mxu1 %vm152_vm0, %v117_v61 }
  0xf8   :  { %v149_v4 = vpop.trf.xlu1 }
  0xfa   :  { %v118_v63 = vpop.trf.xlu0 }
  0xfb   :  { %1107 = vmatprep.mubr.msk.f32.mxu1 %vm152_vm0, %v118_v63 }
  0xfc   :  { %v150_v5 = vpop.trf.xlu1 }
  0xfe   :  { %v119_v0 = vpop.trf.xlu0 }
  0xff   :  { %1108 = vmatmul.mubr.msk.f32.gmra.mrb[14].mxu1 %vm152_vm0, %v119_v0 }
 0x100   :  { %1110 = vmatprep.mubr.msk.f32.mxu1 %vm152_vm0, %v136_v40  ;;  %v151_v6 = vpop.trf.xlu1 }
 0x103   :  { %1111 = vmatmul.mubr.msk.f32.gmra.mrb[16].mxu1 %vm152_vm0, %v137_v42 }
 0x104   :  { %1113 = vmatprep.mubr.msk.f32.mxu1 %vm152_vm0, %v138_v45 }
 0x107   :  { %1114 = vmatmul.mubr.msk.f32.gmra.mrb[18].mxu1 %vm152_vm0, %v139_v47 }
 0x108   :  { %1116 = vmatprep.mubr.msk.f32.mxu1 %vm152_vm0, %v140_v50 }
 0x10b   :  { %1117 = vmatmul.mubr.msk.f32.gmra.mrb[20].mxu1 %vm152_vm0, %v141_v52 }
 0x10c   :  { %1119 = vmatprep.mubr.msk.f32.mxu1 %vm152_vm0, %v142_v55 }
 0x10f   :  { %1120 = vmatmul.mubr.msk.f32.gmra.mrb[22].mxu1 %vm152_vm0, %v143_v57 }
 0x110   :  { %1122 = vmatprep.mubr.msk.f32.mxu1 %vm152_vm0, %v144_v60 }
 0x113   :  { %1123 = vmatmul.mubr.msk.f32.gmra.mrb[24].mxu1 %vm152_vm0, %v145_v62 }
 0x114   :  { %1125 = vmatprep.mubr.msk.f32.mxu1 %vm152_vm0, %v146_v1 }
 0x117   :  { %1126 = vmatmul.mubr.msk.f32.gmra.mrb[26].mxu1 %vm152_vm0, %v147_v2 }
 0x118   :  { %1128 = vmatprep.mubr.msk.f32.mxu1 %vm152_vm0, %v148_v3 }
 0x11b   :  { %1129 = vmatmul.mubr.msk.f32.gmra.mrb[28].mxu1 %vm152_vm0, %v149_v4 }
 0x11c   :  { %1131 = vmatprep.mubr.msk.f32.mxu1 %vm152_vm0, %v150_v5 }
 0x11f   :  { %1132 = vmatmul.mubr.msk.f32.gmra.mrb[30].mxu1 %vm152_vm0, %v151_v6 }
 0x123   :  { %v1258_v56 = vpop.permute.xlu0 %863 }
 0x15a   :  { %v1040_v7 = vpop.f32.mrb[0].mxu0 }
 0x15b   :  { %v414_v8 = vpop.f32.mrb[1].mxu0 }
 0x15c   :  { %733 = vxpose.xlu0.b32.start [1/16] (narrow) %v414_v8, 8 }
 0x160   :  { %734 = vxpose.xlu0.b32.cont [2/16] (narrow) %v1040_v7, 8 }
 0x162   :  { %v1043_v9 = vpop.f32.mrb[2].mxu0 }
 0x163   :  { %v424_v10 = vpop.f32.mrb[3].mxu0 }
 0x164   :  { %735 = vxpose.xlu0.b32.cont [3/16] (narrow) %v424_v10, 8 }
 0x168   :  { %736 = vxpose.xlu0.b32.cont [4/16] (narrow) %v1043_v9, 8 }
 0x16a   :  { %v1046_v11 = vpop.f32.mrb[4].mxu0 }
 0x16b   :  { %v434_v12 = vpop.f32.mrb[5].mxu0 }
 0x16c   :  { %737 = vxpose.xlu0.b32.cont [5/16] (narrow) %v434_v12, 8 }
 0x170   :  { %738 = vxpose.xlu0.b32.cont [6/16] (narrow) %v1046_v11, 8 }
 0x172   :  { %v1049_v13 = vpop.f32.mrb[6].mxu0 }
 0x173   :  { %v444_v14 = vpop.f32.mrb[7].mxu0 }
 0x174   :  { %739 = vxpose.xlu0.b32.cont [7/16] (narrow) %v444_v14, 8 }
 0x178   :  { %740 = vxpose.xlu0.b32.cont [8/16] (narrow) %v1049_v13, 8 }
 0x17a   :  { %v1052_v15 = vpop.f32.mrb[8].mxu0 }
 0x17b   :  { %v454_v16 = vpop.f32.mrb[9].mxu0 }
 0x17c   :  { %741 = vxpose.xlu0.b32.cont [9/16] (narrow) %v454_v16, 8 }
 0x180   :  { %742 = vxpose.xlu0.b32.cont [10/16] (narrow) %v1052_v15, 8 }
 0x182   :  { %v1055_v17 = vpop.f32.mrb[10].mxu0 }
 0x183   :  { %v464_v18 = vpop.f32.mrb[11].mxu0 }
 0x184   :  { %743 = vxpose.xlu0.b32.cont [11/16] (narrow) %v464_v18, 8 }
 0x188   :  { %744 = vxpose.xlu0.b32.cont [12/16] (narrow) %v1055_v17, 8 }
 0x18a   :  { %v1058_v19 = vpop.f32.mrb[12].mxu0 }
 0x18b   :  { %v474_v20 = vpop.f32.mrb[13].mxu0 }
 0x18c   :  { %745 = vxpose.xlu0.b32.cont [13/16] (narrow) %v474_v20, 8 }
 0x190   :  { %746 = vxpose.xlu0.b32.cont [14/16] (narrow) %v1058_v19, 8 }
 0x192   :  { %v1061_v21 = vpop.f32.mrb[14].mxu0 }
 0x193   :  { %v484_v22 = vpop.f32.mrb[15].mxu0 }
 0x194   :  { %747 = vxpose.xlu0.b32.cont [15/16] (narrow) %v484_v22, 8 }
 0x196   :  { %v1064_v23 = vpop.f32.mrb[16].mxu0 }
 0x197   :  { %v494_v24 = vpop.f32.mrb[17].mxu0 }
 0x198   :  { %748 = vxpose.xlu0.b32.end [16/16] (narrow) %v1061_v21, 8  ;;  %765 = vxpose.xlu1.b32.start [1/16] (narrow) %v494_v24, 8 }
 0x19a   :  { %v1088_v25 = vpop.f32.mrb[0].mxu1  ;;  %v1067_v26 = vpop.f32.mrb[18].mxu0 }
 0x19b   :  { %v574_v27 = vpop.f32.mrb[1].mxu1  ;;  %v504_v28 = vpop.f32.mrb[19].mxu0 }
 0x19c   :  { %766 = vxpose.xlu1.b32.cont [2/16] (narrow) %v1064_v23, 8 }
 0x19e   :  { %v1070_v29 = vpop.f32.mrb[20].mxu0 }
 0x19f   :  { %v514_v30 = vpop.f32.mrb[21].mxu0 }
 0x1a0   :  { %767 = vxpose.xlu1.b32.cont [3/16] (narrow) %v504_v28, 8 }
 0x1a2   :  { %v1091_v31 = vpop.f32.mrb[2].mxu1  ;;  %v1073_v32 = vpop.f32.mrb[22].mxu0 }
 0x1a3   :  { %v584_v33 = vpop.f32.mrb[3].mxu1  ;;  %v524_v34 = vpop.f32.mrb[23].mxu0 }
 0x1a4   :  { %768 = vxpose.xlu1.b32.cont [4/16] (narrow) %v1067_v26, 8 }
 0x1a6   :  { %v1076_v35 = vpop.f32.mrb[24].mxu0 }
 0x1a7   :  { %v534_v36 = vpop.f32.mrb[25].mxu0 }
 0x1a8   :  { %769 = vxpose.xlu1.b32.cont [5/16] (narrow) %v514_v30, 8 }
 0x1aa   :  { %v1094_v37 = vpop.f32.mrb[4].mxu1  ;;  %v1079_v38 = vpop.f32.mrb[26].mxu0 }
 0x1ab   :  { %v594_v39 = vpop.f32.mrb[5].mxu1  ;;  %v544_v40 = vpop.f32.mrb[27].mxu0 }
 0x1ac   :  { %770 = vxpose.xlu1.b32.cont [6/16] (narrow) %v1070_v29, 8 }
 0x1ae   :  { %v1082_v41 = vpop.f32.mrb[28].mxu0 }
 0x1af   :  { %v554_v42 = vpop.f32.mrb[29].mxu0 }
 0x1b0   :  { %771 = vxpose.xlu1.b32.cont [7/16] (narrow) %v524_v34, 8 }
 0x1b2   :  { %v1097_v43 = vpop.f32.mrb[6].mxu1  ;;  %v1085_v44 = vpop.f32.mrb[30].mxu0 }
 0x1b3   :  { %v604_v45 = vpop.f32.mrb[7].mxu1  ;;  %v564_v46 = vpop.f32.mrb[31].mxu0 }
 0x1b4   :  { %772 = vxpose.xlu1.b32.cont [8/16] (narrow) %v1073_v32, 8 }
 0x1b8   :  { %773 = vxpose.xlu1.b32.cont [9/16] (narrow) %v534_v36, 8 }
 0x1ba   :  { %v1100_v47 = vpop.f32.mrb[8].mxu1 }
 0x1bb   :  { %v614_v48 = vpop.f32.mrb[9].mxu1 }
 0x1bc   :  { %774 = vxpose.xlu1.b32.cont [10/16] (narrow) %v1076_v35, 8 }
 0x1c0   :  { %775 = vxpose.xlu1.b32.cont [11/16] (narrow) %v544_v40, 8 }
 0x1c2   :  { %v1103_v49 = vpop.f32.mrb[10].mxu1 }
 0x1c3   :  { %v624_v50 = vpop.f32.mrb[11].mxu1 }
 0x1c4   :  { %776 = vxpose.xlu1.b32.cont [12/16] (narrow) %v1079_v38, 8 }
 0x1c8   :  { %777 = vxpose.xlu1.b32.cont [13/16] (narrow) %v554_v42, 8 }
 0x1ca   :  { %v1106_v51 = vpop.f32.mrb[12].mxu1 }
 0x1cb   :  { %v634_v52 = vpop.f32.mrb[13].mxu1 }
 0x1cc   :  { %778 = vxpose.xlu1.b32.cont [14/16] (narrow) %v1082_v41, 8 }
 0x1d0   :  { %779 = vxpose.xlu1.b32.cont [15/16] (narrow) %v564_v46, 8 }
 0x1d2   :  { %v1109_v53 = vpop.f32.mrb[14].mxu1 }
 0x1d3   :  { %v644_v54 = vpop.f32.mrb[15].mxu1 }
 0x1d4   :  { %780 = vxpose.xlu1.b32.end [16/16] (narrow) %v1085_v44, 8 }
 0x1d6   :  { %v1112_v55 = vpop.f32.mrb[16].mxu1 }
 0x1d7   :  { %v654_v57 = vpop.f32.mrb[17].mxu1 }
 0x1d8   :  { %797 = vxpose.xlu1.b32.start [1/16] (narrow) %v574_v27, 8  ;;  %829 = vxpose.xlu0.b32.start [1/16] (narrow) %v654_v57, 8 }
 0x1da   :  { %v1115_v58 = vpop.f32.mrb[18].mxu1 }
 0x1db   :  { %v664_v59 = vpop.f32.mrb[19].mxu1 }
 0x1dc   :  { %798 = vxpose.xlu1.b32.cont [2/16] (narrow) %v1088_v25, 8  ;;  %830 = vxpose.xlu0.b32.cont [2/16] (narrow) %v1112_v55, 8  ;;  %v749_v60 = vpop.trf.xlu0 }
 0x1dd   :  { %v866_v61 = vadd.f32 %v1258_v56, %v749_v60 }
 0x1de   :  { %v1118_v62 = vpop.f32.mrb[20].mxu1 }
 0x1df   :  { %v674_v63 = vpop.f32.mrb[21].mxu1  ;;  %v967_v0 = vmul.f32 -1.442695, %v866_v61 }
 0x1e0   :  { %799 = vxpose.xlu1.b32.cont [3/16] (narrow) %v584_v33, 8  ;;  %831 = vxpose.xlu0.b32.cont [3/16] (narrow) %v664_v59, 8 }
 0x1e1   :  { %1141 = vpow2.f32 %v967_v0 }
 0x1e2   :  { %v1121_v1 = vpop.f32.mrb[22].mxu1 }
 0x1e3   :  { %v684_v2 = vpop.f32.mrb[23].mxu1 }
 0x1e4   :  { %800 = vxpose.xlu1.b32.cont [4/16] (narrow) %v1091_v31, 8  ;;  %832 = vxpose.xlu0.b32.cont [4/16] (narrow) %v1115_v58, 8 }
 0x1e6   :  { %v1124_v3 = vpop.f32.mrb[24].mxu1 }
 0x1e7   :  { %v694_v4 = vpop.f32.mrb[25].mxu1 }
 0x1e8   :  { %801 = vxpose.xlu1.b32.cont [5/16] (narrow) %v594_v39, 8  ;;  %833 = vxpose.xlu0.b32.cont [5/16] (narrow) %v674_v63, 8 }
 0x1ea   :  { %v1127_v5 = vpop.f32.mrb[26].mxu1 }
 0x1eb   :  { %v1142_v6 = vpop.eup %1141  ;;  %v704_v7 = vpop.f32.mrb[27].mxu1 }
 0x1ec   :  { %802 = vxpose.xlu1.b32.cont [6/16] (narrow) %v1094_v37, 8  ;;  %834 = vxpose.xlu0.b32.cont [6/16] (narrow) %v1118_v62, 8  ;;  %v882_v8 = vadd.f32 1.0, %v1142_v6 }
 0x1ee   :  { %1143 = vrcp.f32 %v882_v8  ;;  %v1130_v9 = vpop.f32.mrb[28].mxu1 }
 0x1ef   :  { %v714_v10 = vpop.f32.mrb[29].mxu1 }
 0x1f0   :  { %803 = vxpose.xlu1.b32.cont [7/16] (narrow) %v604_v45, 8  ;;  %835 = vxpose.xlu0.b32.cont [7/16] (narrow) %v684_v2, 8 }
 0x1f2   :  { %v1133_v11 = vpop.f32.mrb[30].mxu1 }
 0x1f3   :  { %v724_v12 = vpop.f32.mrb[31].mxu1 }
 0x1f4   :  { %804 = vxpose.xlu1.b32.cont [8/16] (narrow) %v1097_v43, 8  ;;  %836 = vxpose.xlu0.b32.cont [8/16] (narrow) %v1121_v1, 8 }
 0x1f8   :  { %v1144_v13 = vpop.eup %1143  ;;  %805 = vxpose.xlu1.b32.cont [9/16] (narrow) %v614_v48, 8  ;;  %837 = vxpose.xlu0.b32.cont [9/16] (narrow) %v694_v4, 8 }
 0x1f9   :  { %894 = vst [vmem:[%s1279_s3] sm:$0xff] %v1144_v13 }
 0x1fc   :  { %806 = vxpose.xlu1.b32.cont [10/16] (narrow) %v1100_v47, 8  ;;  %838 = vxpose.xlu0.b32.cont [10/16] (narrow) %v1124_v3, 8 }
 0x200   :  { %807 = vxpose.xlu1.b32.cont [11/16] (narrow) %v624_v50, 8  ;;  %839 = vxpose.xlu0.b32.cont [11/16] (narrow) %v704_v7, 8 }
 0x204   :  { %808 = vxpose.xlu1.b32.cont [12/16] (narrow) %v1103_v49, 8  ;;  %840 = vxpose.xlu0.b32.cont [12/16] (narrow) %v1127_v5, 8 }
 0x208   :  { %809 = vxpose.xlu1.b32.cont [13/16] (narrow) %v634_v52, 8  ;;  %841 = vxpose.xlu0.b32.cont [13/16] (narrow) %v714_v10, 8 }
 0x20c   :  { %810 = vxpose.xlu1.b32.cont [14/16] (narrow) %v1106_v51, 8  ;;  %842 = vxpose.xlu0.b32.cont [14/16] (narrow) %v1130_v9, 8 }
 0x210   :  { %811 = vxpose.xlu1.b32.cont [15/16] (narrow) %v644_v54, 8  ;;  %843 = vxpose.xlu0.b32.cont [15/16] (narrow) %v724_v12, 8 }
 0x214   :  { %812 = vxpose.xlu1.b32.end [16/16] (narrow) %v1109_v53, 8  ;;  %844 = vxpose.xlu0.b32.end [16/16] (narrow) %v1133_v11, 8 }
 0x218   :  { %v781_v14 = vpop.trf.xlu1 }
 0x219   :  { %v867_v15 = vadd.f32 %v1258_v56, %v781_v14 }
 0x21b   :  { %v968_v16 = vmul.f32 -1.442695, %v867_v15 }
 0x21d   :  { %1145 = vpow2.f32 %v968_v16 }
 0x227   :  { %v1146_v17 = vpop.eup %1145 }
 0x228   :  { %v883_v18 = vadd.f32 1.0, %v1146_v17 }
 0x22a   :  { %1147 = vrcp.f32 %v883_v18 }
 0x234   :  { %v1148_v19 = vpop.eup %1147 }
 0x235   :  { %895 = vst [vmem:[%s1279_s3 + $0x8] sm:$0xff] %v1148_v19 }
 0x258   :  { %v845_v20 = vpop.trf.xlu0  ;;  %v813_v21 = vpop.trf.xlu1 }
 0x259   :  { %v869_v22 = vadd.f32 %v1258_v56, %v845_v20  ;;  %v868_v23 = vadd.f32 %v1258_v56, %v813_v21 }
 0x25b   :  { %v970_v24 = vmul.f32 -1.442695, %v869_v22  ;;  %v969_v25 = vmul.f32 -1.442695, %v868_v23 }
 0x25d   :  { %1149 = vpow2.f32 %v970_v24 }
 0x25e   :  { %1151 = vpow2.f32 %v969_v25 }
 0x267   :  { %v1150_v26 = vpop.eup %1149 }
 0x268   :  { %v1152_v27 = vpop.eup %1151  ;;  %v885_v28 = vadd.f32 1.0, %v1150_v26 }
 0x269   :  { %v884_v29 = vadd.f32 1.0, %v1152_v27 }
 0x26a   :  { %1153 = vrcp.f32 %v885_v28 }
 0x26b   :  { %1155 = vrcp.f32 %v884_v29 }
 0x274   :  { %v1154_v30 = vpop.eup %1153 }
 0x275   :  { %v1156_v31 = vpop.eup %1155  ;;  %897 = vst [vmem:[%s1279_s3 + $0x18] sm:$0xff] %v1154_v30 }
 0x276   :  { %896 = vst [vmem:[%s1279_s3 + $0x10] sm:$0xff] %v1156_v31 }

</bundles_post_ra>
